<compile_context>
chip_gen: v7x
topology: tpu7x:2x2x1
jax: 0.10.0
libtpu: 0.0.40
codegen_flags: <defaults>
</compile_context>

<pallas_src>
import jax
import jax.numpy as jnp
from jax.experimental import pallas as pl
from jax.experimental.pallas import tpu as pltpu


def _round_up(n, m):
    return ((n + m - 1) // m) * m


def mlp_kernel(x_ref, w1_ref, b1_ref, w2_ref, b2_ref, w3_ref, b3_ref, o_ref):
    # In-kernel f32 -> bf16 cast (VPU; free in this HBM-bound regime). MXU accumulates f32.
    x = x_ref[...].astype(w1_ref.dtype)
    # hidden1 + ReLU
    h1 = jnp.dot(x, w1_ref[...], preferred_element_type=jnp.float32)
    h1 = jnp.maximum(h1 + b1_ref[...], 0.0)
    # hidden2 + ReLU
    h2 = jnp.dot(h1.astype(w2_ref.dtype), w2_ref[...], preferred_element_type=jnp.float32)
    h2 = jnp.maximum(h2 + b2_ref[...], 0.0)
    # out (no activation); lane-dense 128-wide padded output, extra columns are zero.
    o = jnp.dot(h2.astype(w3_ref.dtype), w3_ref[...], preferred_element_type=jnp.float32)
    o_ref[...] = (o + b3_ref[...]).astype(o_ref.dtype)


def prepare_params(params, *, use_bf16=True, d_out_pad=128):
    """One-time preprocessing of the params pytree (hoisted out of the forward call):
    weights -> bf16 (MXU-native), last layer padded to a lane-dense 128-wide output,
    biases kept f32 (accumulation/elementwise stay f32)."""
    w1, b1 = params["w1"], params["b1"]   # (784, 128), (1, 128)
    w2, b2 = params["w2"], params["b2"]   # (128, 256), (1, 256)
    w3, b3 = params["w3"], params["b3"]   # (256, 10),  (1, 10)
    d_out = w3.shape[1]
    w3p = jnp.pad(w3, ((0, 0), (0, d_out_pad - d_out)))
    b3p = jnp.pad(b3, ((0, 0), (0, d_out_pad - d_out)))
    mat_dtype = jnp.bfloat16 if use_bf16 else jnp.float32
    return {
        "w1": w1.astype(mat_dtype), "b1": b1.astype(jnp.float32),
        "w2": w2.astype(mat_dtype), "b2": b2.astype(jnp.float32),
        "w3": w3p.astype(mat_dtype), "b3": b3p.astype(jnp.float32),
    }


def mnist_nn_forward(x, prepared, *, batch_tile=2048, d_out=10):
    """x: (B, 784) float32.  prepared: output of prepare_params().

    batch_tile guidance: 2048 amortizes per-step pipeline overhead on all generations
    and fits v7x's 64 MiB VMEM (x tiles 2x6.1 MiB f32 + intermediates + weights ~19 MiB);
    up to 4096 is fine with the explicit 48 MiB vmem limit set below.
    """
    B, D_in = x.shape
    w1, b1 = prepared["w1"], prepared["b1"]
    w2, b2 = prepared["w2"], prepared["b2"]
    w3, b3 = prepared["w3"], prepared["b3"]
    H1, H2, D_out_pad = w1.shape[1], w2.shape[1], w3.shape[1]

    # --- choose an effective batch tile (multiple of 8 for f32 sublane alignment) ---
    bt = min(batch_tile, _round_up(B, 8))
    if B >= 512:
        # Keep >= 2 grid steps so the "parallel" batch axis splits across v7x's 2 TCs.
        bt = min(bt, _round_up(pl.cdiv(B, 2), 256))
    bt = max(8, _round_up(bt, 8))
    grid = (pl.cdiv(B, bt),)   # ragged last block handled by Pallas (masked writeback)

    # Weights/biases are tiny (< 0.6 MiB total) -> whole tensors resident per grid step
    # (constant index_map: Pallas does not re-fetch them between steps).
    full = lambda a: pl.BlockSpec(a.shape, lambda i: (0, 0))

    cost = pl.CostEstimate(
        flops=2 * B * (D_in * H1 + H1 * H2 + H2 * D_out_pad),
        transcendentals=0,
        bytes_accessed=(B * D_in * 4                         # stream x (f32, read once)
                        + B * D_out_pad * 2                  # write padded bf16 output
                        + (D_in * H1 + H1 * H2 + H2 * D_out_pad) * 2   # bf16 weights
                        + (H1 + H2 + D_out_pad) * 4),        # f32 biases
    )

    out_pad = pl.pallas_call(
        mlp_kernel,
        out_shape=jax.ShapeDtypeStruct((B, D_out_pad), jnp.bfloat16),
        grid_spec=pltpu.PrefetchScalarGridSpec(
            num_scalar_prefetch=0,
            grid=grid,
            in_specs=[
                pl.BlockSpec((bt, D_in), lambda i: (i, 0)),   # x tile over batch
                full(w1), full(b1),
                full(w2), full(b2),
                full(w3), full(b3),
            ],
            out_specs=pl.BlockSpec((bt, D_out_pad), lambda i: (i, 0)),
        ),
        compiler_params=pltpu.CompilerParams(
            dimension_semantics=("parallel",),        # batch axis shards across v7x's 2 TCs
            vmem_limit_bytes=48 * 1024 * 1024,        # > v5e 16 MiB / v6e,v7x 32 MiB defaults
        ),
        cost_estimate=cost,
    )(x, w1, b1, w2, b2, w3, b3)

    # strip the lane-padding of the final layer and return f32 logits
    return out_pad[:, :d_out].astype(jnp.float32)


def init_params(key):
    """Deterministic init mirroring nn.Linear's U(-1/sqrt(fan_in), 1/sqrt(fan_in))."""
    def linear(k, fan_in, fan_out):
        kw, kb = jax.random.split(k)
        bound = 1.0 / jnp.sqrt(fan_in)
        w = jax.random.uniform(kw, (fan_in, fan_out), jnp.float32, -bound, bound)
        b = jax.random.uniform(kb, (1, fan_out), jnp.float32, -bound, bound)
        return w, b

    k1, k2, k3 = jax.random.split(key, 3)
    w1, b1 = linear(k1, 28 * 28, 128)
    w2, b2 = linear(k2, 128, 256)
    w3, b3 = linear(k3, 256, 10)
    return {"w1": w1, "b1": b1, "w2": w2, "b2": b2, "w3": w3, "b3": b3}


if __name__ == "__main__":
    key = jax.random.PRNGKey(0)
    k_params, k_x = jax.random.split(key)

    params = init_params(k_params)
    prepared = prepare_params(params)   # one-time weight prep (bf16 cast + lane padding)

    B = 32  # small batch for the smoke test; wrapper handles any B (ragged last block)
    x = jax.random.normal(k_x, (B, 28 * 28), dtype=jnp.float32)

    out = mnist_nn_forward(x, prepared)
    out = jax.block_until_ready(out)

    # Reference check in plain JAX f32 (same math as the PyTorch forward). The kernel uses
    # bf16 dot operands / bf16 output with f32 accumulation, so tolerances are loosened.
    h1 = jnp.maximum(x @ params["w1"] + params["b1"], 0.0)
    h2 = jnp.maximum(h1 @ params["w2"] + params["b2"], 0.0)
    ref = h2 @ params["w3"] + params["b3"]
    assert out.shape == (B, 10)
    err = float(jnp.max(jnp.abs(out - ref)))
    assert jnp.allclose(out, ref, atol=3e-2, rtol=3e-2), f"max abs err = {err}"

    print("KERNEL_OK")
</pallas_src>

<mosaic_0001>
module attributes {stable_mosaic.version = 11 : i64} {
  func.func @mlp_kernel(%arg0: i32, %arg1: memref<32x784xf32, #tpu.memory_space<vmem>>, %arg2: memref<784x128xbf16, #tpu.memory_space<vmem>>, %arg3: memref<1x128xf32, #tpu.memory_space<vmem>>, %arg4: memref<128x256xbf16, #tpu.memory_space<vmem>>, %arg5: memref<1x256xf32, #tpu.memory_space<vmem>>, %arg6: memref<256x128xbf16, #tpu.memory_space<vmem>>, %arg7: memref<1x128xf32, #tpu.memory_space<vmem>>, %arg8: memref<32x128xbf16, #tpu.memory_space<vmem>>) attributes {dimension_semantics = [#tpu.dimension_semantics<parallel>], iteration_bounds = array<i64: 1>, scalar_prefetch = 0 : i64, scratch_operands = 0 : i64, tpu.core_type = #tpu.core_type<tc>, window_params = [{transform_indices = @transform_0, window_bounds = array<i64: 32, 784>}, {pipeline_mode = #tpu.pipeline_mode<synchronous>, transform_indices = @transform_1, window_bounds = array<i64: 784, 128>}, {pipeline_mode = #tpu.pipeline_mode<synchronous>, transform_indices = @transform_2, window_bounds = array<i64: 1, 128>}, {pipeline_mode = #tpu.pipeline_mode<synchronous>, transform_indices = @transform_3, window_bounds = array<i64: 128, 256>}, {pipeline_mode = #tpu.pipeline_mode<synchronous>, transform_indices = @transform_4, window_bounds = array<i64: 1, 256>}, {pipeline_mode = #tpu.pipeline_mode<synchronous>, transform_indices = @transform_5, window_bounds = array<i64: 256, 128>}, {pipeline_mode = #tpu.pipeline_mode<synchronous>, transform_indices = @transform_6, window_bounds = array<i64: 1, 128>}, {transform_indices = @transform_7, window_bounds = array<i64: 32, 128>}]} {
    %c0 = arith.constant 0 : index
    %c0_0 = arith.constant 0 : index
    %0 = vector.load %arg1[%c0, %c0_0] : memref<32x784xf32, #tpu.memory_space<vmem>>, vector<32x784xf32>
    %1 = arith.truncf %0 : vector<32x784xf32> to vector<32x784xbf16>
    %c0_1 = arith.constant 0 : index
    %c0_2 = arith.constant 0 : index
    %2 = vector.load %arg2[%c0_1, %c0_2] : memref<784x128xbf16, #tpu.memory_space<vmem>>, vector<784x128xbf16>
    %cst = arith.constant dense<0.000000e+00> : vector<32x128xf32>
    %3 = tpu.matmul %1, %2, %cst {dimension_numbers = #tpu.dot_dimension_numbers<[1], [0], [0], [1], [0, 0, 1, 1], [], []>} : vector<32x784xbf16>, vector<784x128xbf16>, vector<32x128xf32> -> vector<32x128xf32>
    %c0_3 = arith.constant 0 : index
    %c0_4 = arith.constant 0 : index
    %4 = vector.load %arg3[%c0_3, %c0_4] : memref<1x128xf32, #tpu.memory_space<vmem>>, vector<1x128xf32>
    %5 = vector.broadcast %4 : vector<1x128xf32> to vector<32x128xf32>
    %6 = arith.addf %3, %5 : vector<32x128xf32>
    %cst_5 = arith.constant 0.000000e+00 : f32
    %7 = vector.broadcast %cst_5 : f32 to vector<32x128xf32>
    %8 = arith.maximumf %6, %7 : vector<32x128xf32>
    %9 = arith.truncf %8 : vector<32x128xf32> to vector<32x128xbf16>
    %c0_6 = arith.constant 0 : index
    %c0_7 = arith.constant 0 : index
    %10 = vector.load %arg4[%c0_6, %c0_7] : memref<128x256xbf16, #tpu.memory_space<vmem>>, vector<128x256xbf16>
    %cst_8 = arith.constant dense<0.000000e+00> : vector<32x256xf32>
    %11 = tpu.matmul %9, %10, %cst_8 {dimension_numbers = #tpu.dot_dimension_numbers<[1], [0], [0], [1], [0, 0, 1, 1], [], []>} : vector<32x128xbf16>, vector<128x256xbf16>, vector<32x256xf32> -> vector<32x256xf32>
    %c0_9 = arith.constant 0 : index
    %c0_10 = arith.constant 0 : index
    %12 = vector.load %arg5[%c0_9, %c0_10] : memref<1x256xf32, #tpu.memory_space<vmem>>, vector<1x256xf32>
    %13 = vector.broadcast %12 : vector<1x256xf32> to vector<32x256xf32>
    %14 = arith.addf %11, %13 : vector<32x256xf32>
    %cst_11 = arith.constant 0.000000e+00 : f32
    %15 = vector.broadcast %cst_11 : f32 to vector<32x256xf32>
    %16 = arith.maximumf %14, %15 : vector<32x256xf32>
    %17 = arith.truncf %16 : vector<32x256xf32> to vector<32x256xbf16>
    %c0_12 = arith.constant 0 : index
    %c0_13 = arith.constant 0 : index
    %18 = vector.load %arg6[%c0_12, %c0_13] : memref<256x128xbf16, #tpu.memory_space<vmem>>, vector<256x128xbf16>
    %cst_14 = arith.constant dense<0.000000e+00> : vector<32x128xf32>
    %19 = tpu.matmul %17, %18, %cst_14 {dimension_numbers = #tpu.dot_dimension_numbers<[1], [0], [0], [1], [0, 0, 1, 1], [], []>} : vector<32x256xbf16>, vector<256x128xbf16>, vector<32x128xf32> -> vector<32x128xf32>
    %c0_15 = arith.constant 0 : index
    %c0_16 = arith.constant 0 : index
    %20 = vector.load %arg7[%c0_15, %c0_16] : memref<1x128xf32, #tpu.memory_space<vmem>>, vector<1x128xf32>
    %21 = vector.broadcast %20 : vector<1x128xf32> to vector<32x128xf32>
    %22 = arith.addf %19, %21 : vector<32x128xf32>
    %23 = arith.truncf %22 : vector<32x128xf32> to vector<32x128xbf16>
    %c0_17 = arith.constant 0 : index
    %c0_18 = arith.constant 0 : index
    %24 = vector.load %arg8[%c0_17, %c0_18] : memref<32x128xbf16, #tpu.memory_space<vmem>>, vector<32x128xbf16>
    tpu.vector_store %arg8[%c0_17, %c0_18], %23 {strides = array<i32>} : memref<32x128xbf16, #tpu.memory_space<vmem>>, vector<32x128xbf16>,
    return
  }
  func.func @transform_0(%arg0: i32) -> (i32, i32) {
    %c0_i32 = arith.constant 0 : i32
    %c0_i32_0 = arith.constant 0 : i32
    return %arg0, %c0_i32 : i32, i32
  }
  func.func @transform_1(%arg0: i32) -> (i32, i32) {
    %c0_i32 = arith.constant 0 : i32
    %c0_i32_0 = arith.constant 0 : i32
    %c0_i32_1 = arith.constant 0 : i32
    return %c0_i32, %c0_i32_0 : i32, i32
  }
  func.func @transform_2(%arg0: i32) -> (i32, i32) {
    %c0_i32 = arith.constant 0 : i32
    %c0_i32_0 = arith.constant 0 : i32
    %c0_i32_1 = arith.constant 0 : i32
    return %c0_i32, %c0_i32_0 : i32, i32
  }
  func.func @transform_3(%arg0: i32) -> (i32, i32) {
    %c0_i32 = arith.constant 0 : i32
    %c0_i32_0 = arith.constant 0 : i32
    %c0_i32_1 = arith.constant 0 : i32
    return %c0_i32, %c0_i32_0 : i32, i32
  }
  func.func @transform_4(%arg0: i32) -> (i32, i32) {
    %c0_i32 = arith.constant 0 : i32
    %c0_i32_0 = arith.constant 0 : i32
    %c0_i32_1 = arith.constant 0 : i32
    return %c0_i32, %c0_i32_0 : i32, i32
  }
  func.func @transform_5(%arg0: i32) -> (i32, i32) {
    %c0_i32 = arith.constant 0 : i32
    %c0_i32_0 = arith.constant 0 : i32
    %c0_i32_1 = arith.constant 0 : i32
    return %c0_i32, %c0_i32_0 : i32, i32
  }
  func.func @transform_6(%arg0: i32) -> (i32, i32) {
    %c0_i32 = arith.constant 0 : i32
    %c0_i32_0 = arith.constant 0 : i32
    %c0_i32_1 = arith.constant 0 : i32
    return %c0_i32, %c0_i32_0 : i32, i32
  }
  func.func @transform_7(%arg0: i32) -> (i32, i32) {
    %c0_i32 = arith.constant 0 : i32
    %c0_i32_0 = arith.constant 0 : i32
    return %arg0, %c0_i32 : i32, i32
  }
}

</mosaic_0001>

<bundles_post_ra>
// kernel: tpu_custom_call.1
= control target key start
LH: loop header
LB: loop body
LE: loop exit
PB: predicated region body
PF: predicated region fallthrough
CT: control target
= control target key end

     0   :  { %12 = vsyncpa [#allocation3], 0  ;;  %s1707_s0 = inlined_call_operand.hbm [shape: f32[32,784], index: 0, kind: input, shape index: {}]   ;;  %s1708_s1 = inlined_call_operand.hbm [shape: bf16[784,128], index: 1, kind: input, shape index: {}]   ;;  %s1709_s2 = inlined_call_operand.vmem [shape: f32[1,128], index: 2, kind: input, shape index: {}]   ;;  %s1710_s3 = inlined_call_operand.hbm [shape: bf16[128,256], index: 3, kind: input, shape index: {}]   ;;  %s1711_s4 = inlined_call_operand.vmem [shape: f32[1,256], index: 4, kind: input, shape index: {}]   ;;  %s1712_s5 = inlined_call_operand.hbm [shape: bf16[256,128], index: 5, kind: input, shape index: {}]   ;;  %s1713_s6 = inlined_call_operand.vmem [shape: f32[1,128], index: 6, kind: input, shape index: {}]   ;;  %s1714_s7 = inlined_call_operand.hbm [shape: bf16[32,128], index: 7, kind: output, shape index: {}]  }
   0x1   :  { %13 = vsyncpa [#allocation6], 0 }
   0x2   :  { %14 = vsyncpa [#allocation9], 0 }
   0x3   :  { %15 = vsyncpa [#allocation4], 0  ;;  %s1573_s24 = smov [#allocation5]   ;;  %s1455_s28 = scalar_lea.hbm %s1708_s1, 6272 }
   0x4   :  { %s33_s25 = sshll.u32 %s1573_s24, 4  ;;  %p1456_p0 = scmp.ne.s32.totalorder %s1708_s1, %s1455_s28  ;;  %s34_s25 = int_to_ptr.vmem [resolvable:$true] %s33_s25 }
   0x5   :  { %p1459_p1 = scmp.lt.u32.totalorder %s1455_s28, %s1708_s1 }
   0x7   :  { %p1461_p2 = pnand %p1459_p1, %p1456_p0 }
   0x9   :  { %1464 = shalt.err (!%p1461_p2)
}
   0xa   :  { %s1465_s10 = scalar_lea.vmem %s34_s25, 6272  ;;  %p1470_p4 = scmp.lt.s32.totalorder %s34_s25, %s34_s25 }
   0xb   :  { %p1466_p3 = scmp.ne.s32.totalorder %s34_s25, %s1465_s10  ;;  %p1471_p5 = scmp.lt.s32.totalorder %s1465_s10, %s1465_s10 }
   0xd   :  { %p1472_p6 = por %p1471_p5, %p1470_p4 }
   0xf   :  { %p1473_p7 = pnand %p1472_p6, %p1466_p3 }
  0x11   :  { %1476 = shalt.err (!%p1473_p7)
}
  0x12   :  { %s1574_s11 = smov 64   ;;  %s1575_s12 = smov 4  }
  0x13   :  { %39 = dma.hbm_to_vmem [thread:$0]  %s1708_s1, 6272, %s34_s25, [#allocation6], %s1574_s11, %s1574_s11, %s1575_s12  }
  0x14   :  { %s1576_s15 = smov [#allocation2]   ;;  %s1477_s19 = scalar_lea.hbm %s1707_s0, 3584 }
  0x15   :  { %s21_s16 = sshll.u32 %s1576_s15, 4  ;;  %p1478_p8 = scmp.ne.s32.totalorder %s1707_s0, %s1477_s19  ;;  %s22_s16 = int_to_ptr.vmem [resolvable:$true] %s21_s16 }
  0x16   :  { %p1481_p9 = scmp.lt.u32.totalorder %s1477_s19, %s1707_s0 }
  0x18   :  { %p1483_p10 = pnand %p1481_p9, %p1478_p8 }
  0x1a   :  { %1486 = shalt.err (!%p1483_p10)
}
  0x1b   :  { %s1487_s24 = scalar_lea.vmem %s22_s16, 3584  ;;  %p1492_p12 = scmp.lt.s32.totalorder %s22_s16, %s22_s16 }
  0x1c   :  { %p1488_p11 = scmp.ne.s32.totalorder %s22_s16, %s1487_s24  ;;  %p1493_p13 = scmp.lt.s32.totalorder %s1487_s24, %s1487_s24 }
  0x1e   :  { %p1494_p0 = por %p1493_p13, %p1492_p12 }
  0x20   :  { %p1495_p1 = pnand %p1494_p0, %p1488_p11 }
  0x22   :  { %1498 = shalt.err (!%p1495_p1)
}
  0x23   :  { %s1577_s1 = smov 896   ;;  %s1578_s25 = smov 56  }
  0x24   :  { %27 = dma.hbm_to_vmem [thread:$0]  %s1707_s0, 3584, %s22_s16, [#allocation3], %s1577_s1, %s1577_s1, %s1578_s25  }
  0x25   :  { %s1579_s28 = smov [#allocation7]   ;;  %s1499_s9 = scalar_lea.hbm %s1710_s3, 2048 }
  0x26   :  { %s47_s29 = sshll.u32 %s1579_s28, 4  ;;  %p1500_p2 = scmp.ne.s32.totalorder %s1710_s3, %s1499_s9  ;;  %s48_s29 = int_to_ptr.vmem [resolvable:$true] %s47_s29 }
  0x27   :  { %p1503_p3 = scmp.lt.u32.totalorder %s1499_s9, %s1710_s3 }
  0x29   :  { %p1505_p4 = pnand %p1503_p3, %p1500_p2 }
  0x2b   :  { %1508 = shalt.err (!%p1505_p4)
}
  0x2c   :  { %s1509_s17 = scalar_lea.vmem %s48_s29, 2048  ;;  %p1514_p6 = scmp.lt.s32.totalorder %s48_s29, %s48_s29 }
  0x2d   :  { %p1510_p5 = scmp.ne.s32.totalorder %s48_s29, %s1509_s17  ;;  %p1515_p7 = scmp.lt.s32.totalorder %s1509_s17, %s1509_s17 }
  0x2f   :  { %p1516_p8 = por %p1515_p7, %p1514_p6 }
  0x31   :  { %p1517_p9 = pnand %p1516_p8, %p1510_p5 }
  0x33   :  { %1520 = shalt.err (!%p1517_p9)
}
  0x34   :  { %s1580_s0 = smov 128   ;;  %s1581_s16 = smov 8  }
  0x35   :  { %53 = dma.hbm_to_vmem [thread:$0]  %s1710_s3, 2048, %s48_s29, [#allocation6], %s1580_s0, %s1580_s0, %s1581_s16  }
  0x36   :  { %s1582_s20 = smov [#allocation8]   ;;  %s1521_s24 = scalar_lea.hbm %s1712_s5, 2048 }
  0x37   :  { %s61_s21 = sshll.u32 %s1582_s20, 4  ;;  %p1522_p10 = scmp.ne.s32.totalorder %s1712_s5, %s1521_s24  ;;  %s62_s21 = int_to_ptr.vmem [resolvable:$true] %s61_s21 }
  0x38   :  { %p1525_p11 = scmp.lt.u32.totalorder %s1521_s24, %s1712_s5 }
  0x3a   :  { %p1527_p12 = pnand %p1525_p11, %p1522_p10 }
  0x3c   :  { %1530 = shalt.err (!%p1527_p12)
}
  0x3d   :  { %s1531_s28 = scalar_lea.vmem %s62_s21, 2048  ;;  %p1536_p0 = scmp.lt.s32.totalorder %s62_s21, %s62_s21 }
  0x3e   :  { %p1532_p13 = scmp.ne.s32.totalorder %s62_s21, %s1531_s28  ;;  %p1537_p1 = scmp.lt.s32.totalorder %s1531_s28, %s1531_s28 }
  0x40   :  { %p1538_p2 = por %p1537_p1, %p1536_p0 }
  0x42   :  { %p1539_p3 = pnand %p1538_p2, %p1532_p13 }
  0x44   :  { %1542 = shalt.err (!%p1539_p3)
}
  0x45   :  { %67 = dma.hbm_to_vmem [thread:$0]  %s1712_s5, 2048, %s62_s21, [#allocation9], %s1574_s11, %s1574_s11, %s1575_s12  }
  0x46   :  { %1565 = dma.done.wait [#allocation3], 3584  }
  0x47   :  { %1566 = vsyncadd [#allocation3], 4294963712 }
  0x48   :  { %1567 = dma.done.wait [#allocation6], 8320  }
  0x49   :  { %1568 = vsyncadd [#allocation6], 4294958976 }
  0x4a   :  { %1569 = dma.done.wait [#allocation9], 2048  }
  0x4b   :  { %1570 = vsyncadd [#allocation9], 4294965248  ;;  %v1366_v0 = vld [vmem:[#allocation5 + $0x40] sm:$0xff]   ;;  %v1370_v4 = vld [vmem:[#allocation5 + $0x48] sm:$0xff]   ;;  %vm524_vm0 = vcmask 130048   ;;  %s1584_s10 = smov [#allocation10]  }
  0x4c   :  { %v1367_v1 = vld [vmem:[#allocation5] sm:$0xff]   ;;  %1233 = vmatprep.subr.bf16.mxu0 %v1366_v0  ;;  %v1371_v5 = vld [vmem:[#allocation5 + $0x8] sm:$0xff]   ;;  %v1374_v8 = vld [vmem:[#allocation5 + $0x50] sm:$0xff]   ;;  %s1115_s13 = sshll.u32 %s1584_s10, 4  ;;  %s1116_s13 = int_to_ptr.vmem [resolvable:$true] %s1115_s13 }
  0x4d   :  { %v1368_v2 = vld [vmem:[#allocation5 + $0xc0] sm:$0xff]   ;;  %1234 = vmatpush3.bf16.msra.mxu0 %v1367_v1  ;;  %v1372_v6 = vld [vmem:[#allocation5 + $0xc8] sm:$0xff]   ;;  %v1375_v9 = vld [vmem:[#allocation5 + $0x10] sm:$0xff]   ;;  %p1548_p5 = scmp.lt.s32.totalorder %s1116_s13, %s1116_s13 }
  0x4e   :  { %v1369_v3 = vld [vmem:[#allocation5 + $0x80] sm:$0xff]   ;;  %1261 = vmatprep.subr.bf16.mxu1 %v1368_v2  ;;  %1235 = vmatprep.subr.bf16.mxu0 %v1370_v4  ;;  %v1373_v7 = vld [vmem:[#allocation5 + $0x88] sm:$0xff]   ;;  %v1376_v10 = vld [vmem:[#allocation5 + $0xd0] sm:$0xff]  }
  0x4f   :  { %1262 = vmatpush3.bf16.msra.mxu1 %v1369_v3  ;;  %v1377_v11 = vld [vmem:[#allocation5 + $0x90] sm:$0xff]   ;;  %v1378_v12 = vld [vmem:[#allocation5 + $0x58] sm:$0xff]   ;;  %v1382_v16 = vld [vmem:[#allocation5 + $0x60] sm:$0xff]  }
  0x50   :  { %1263 = vmatprep.subr.bf16.mxu1 %v1372_v6  ;;  %v1379_v13 = vld [vmem:[#allocation5 + $0x18] sm:$0xff]   ;;  %v1383_v17 = vld [vmem:[#allocation5 + $0x20] sm:$0xff]   ;;  %v1386_v20 = vld [vmem:[#allocation5 + $0x68] sm:$0xff]  }
  0x51   :  { %1236 = vmatpush3.bf16.msra.mxu0 %v1371_v5  ;;  %v1380_v14 = vld [vmem:[#allocation5 + $0xd8] sm:$0xff]   ;;  %v1384_v18 = vld [vmem:[#allocation5 + $0xe0] sm:$0xff]   ;;  %v1387_v21 = vld [vmem:[#allocation5 + $0x28] sm:$0xff]  }
  0x52   :  { %1237 = vmatprep.subr.bf16.mxu0 %v1374_v8  ;;  %v1381_v15 = vld [vmem:[#allocation5 + $0x98] sm:$0xff]   ;;  %v1385_v19 = vld [vmem:[#allocation5 + $0xa0] sm:$0xff]   ;;  %v1388_v22 = vld [vmem:[#allocation5 + $0xe8] sm:$0xff]  }
  0x53   :  { %1264 = vmatpush3.bf16.msra.mxu1 %v1373_v7  ;;  %v1389_v23 = vld [vmem:[#allocation5 + $0xa8] sm:$0xff]   ;;  %v1390_v24 = vld [vmem:[#allocation5 + $0x70] sm:$0xff]   ;;  %v1394_v28 = vld [vmem:[#allocation5 + $0x78] sm:$0xff]  }
  0x54   :  { %1265 = vmatprep.subr.bf16.mxu1 %v1376_v10  ;;  %v1391_v25 = vld [vmem:[#allocation5 + $0x30] sm:$0xff]   ;;  %v1395_v29 = vld [vmem:[#allocation5 + $0x38] sm:$0xff]   ;;  %v84_v31 = vld [vmem:[#allocation2 + $0x8] sm:$0xff] }
  0x55   :  { %1238 = vmatpush3.bf16.msra.mxu0 %v1375_v9  ;;  %v1392_v26 = vld [vmem:[#allocation5 + $0xf0] sm:$0xff]   ;;  %v1396_v30 = vld [vmem:[#allocation5 + $0xf8] sm:$0xff]   ;;  %v91_v32 = vld [vmem:[#allocation2 + $0x40] sm:$0xff] }
  0x56   :  { %1239 = vmatprep.subr.bf16.mxu0 %v1378_v12  ;;  %v1393_v27 = vld [vmem:[#allocation5 + $0xb0] sm:$0xff]   ;;  %v112_v33 = vpack.c.bf16 %v91_v32, %v84_v31  ;;  %v1397_v34 = vld [vmem:[#allocation5 + $0xb8] sm:$0xff]   ;;  %v83_v35 = vld [vmem:[#allocation2] sm:$0xff] }
  0x57   :  { %1266 = vmatpush3.bf16.msra.mxu1 %v1377_v11  ;;  %v90_v36 = vld [vmem:[#allocation2 + $0x38] sm:$0xff]  ;;  %v1398_v38 = vld [vmem:[#allocation5 + $0x140] sm:$0xff]   ;;  %v93_v40 = vld [vmem:[#allocation2 + $0x50] sm:$0xff] }
  0x58   :  { %1267 = vmatprep.subr.bf16.mxu1 %v1380_v14  ;;  %563 = vmatprep.mubr.bf16.mxu0 %v112_v33  ;;  %v111_v37 = vpack.c.bf16 %v90_v36, %v83_v35  ;;  %v86_v39 = vld [vmem:[#allocation2 + $0x18] sm:$0xff]  ;;  %v1399_v42 = vld [vmem:[#allocation5 + $0x100] sm:$0xff]   ;;  %v85_v43 = vld [vmem:[#allocation2 + $0x10] sm:$0xff] }
  0x59   :  { %1240 = vmatpush3.bf16.msra.mxu0 %v1379_v13  ;;  %v114_v41 = vpack.c.bf16 %v93_v40, %v86_v39  ;;  %v92_v44 = vld [vmem:[#allocation2 + $0x48] sm:$0xff]  ;;  %v1402_v48 = vld [vmem:[#allocation5 + $0x150] sm:$0xff]   ;;  %v1404_v50 = vld [vmem:[#allocation5 + $0x158] sm:$0xff]  }
  0x5a   :  { %1241 = vmatprep.subr.bf16.mxu0 %v1382_v16  ;;  %v113_v45 = vpack.c.bf16 %v92_v44, %v85_v43  ;;  %v1400_v46 = vld [vmem:[#allocation5 + $0x148] sm:$0xff]   ;;  %v1403_v49 = vld [vmem:[#allocation5 + $0x110] sm:$0xff]   ;;  %v1405_v51 = vld [vmem:[#allocation5 + $0x118] sm:$0xff]   ;;  %v1583_v43 = vmov 0  }
  0x5b   :  { %1268 = vmatpush3.bf16.msra.mxu1 %v1381_v15  ;;  %612 = vmatprep.mubr.bf16.mxu1 %v114_v41  ;;  %v1401_v47 = vld [vmem:[#allocation5 + $0x108] sm:$0xff]   ;;  %v1406_v52 = vld [vmem:[#allocation5 + $0x160] sm:$0xff]   ;;  %v98_v54 = vld [vmem:[#allocation2 + $0x78] sm:$0xff] }
  0x5c   :  { %1269 = vmatprep.subr.bf16.mxu1 %v1384_v18  ;;  %v1408_v53 = vld [vmem:[#allocation5 + $0x180] sm:$0xff]   ;;  %v105_v55 = vld [vmem:[#allocation2 + $0xb0] sm:$0xff]  ;;  %v104_v59 = vld [vmem:[#allocation2 + $0xa8] sm:$0xff] }
  0x5d   :  { %1242 = vmatpush3.bf16.msra.mxu0 %v1383_v17  ;;  %v1407_v56 = vld [vmem:[#allocation5 + $0x120] sm:$0xff]   ;;  %v119_v57 = vpack.c.bf16 %v105_v55, %v98_v54  ;;  %v97_v58 = vld [vmem:[#allocation2 + $0x70] sm:$0xff]  ;;  %v1409_v60 = vld [vmem:[#allocation5 + $0x168] sm:$0xff]  }
  0x5e   :  { %1243 = vmatprep.subr.bf16.mxu0 %v1386_v20  ;;  %v118_v61 = vpack.c.bf16 %v104_v59, %v97_v58  ;;  %v100_v62 = vld [vmem:[#allocation2 + $0x88] sm:$0xff]  ;;  %v107_v63 = vld [vmem:[#allocation2 + $0xc0] sm:$0xff]  ;;  %v106_v2 = vld [vmem:[#allocation2 + $0xb8] sm:$0xff] }
  0x5f   :  { %1270 = vmatpush3.bf16.msra.mxu1 %v1385_v19  ;;  %v99_v0 = vld [vmem:[#allocation2 + $0x80] sm:$0xff]  ;;  %v121_v1 = vpack.c.bf16 %v107_v63, %v100_v62  ;;  %v1410_v4 = vld [vmem:[#allocation5 + $0x128] sm:$0xff]   ;;  %v1411_v5 = vld [vmem:[#allocation5 + $0x170] sm:$0xff]  }
  0x60   :  { %1271 = vmatprep.subr.bf16.mxu1 %v1388_v22  ;;  %v120_v3 = vpack.c.bf16 %v106_v2, %v99_v0  ;;  %v88_v6 = vld [vmem:[#allocation2 + $0x28] sm:$0xff]  ;;  %v95_v7 = vld [vmem:[#allocation2 + $0x60] sm:$0xff]  ;;  %v89_v9 = vld [vmem:[#allocation2 + $0x30] sm:$0xff] }
  0x61   :  { %1244 = vmatpush3.bf16.msra.mxu0 %v1387_v21  ;;  %v116_v8 = vpack.c.bf16 %v95_v7, %v88_v6  ;;  %v96_v10 = vld [vmem:[#allocation2 + $0x68] sm:$0xff]  ;;  %v103_v11 = vld [vmem:[#allocation2 + $0xa0] sm:$0xff]  ;;  %v110_v12 = vld [vmem:[#allocation2 + $0xd8] sm:$0xff] }
  0x62   :  { %1245 = vmatprep.subr.bf16.mxu0 %v1390_v24  ;;  %v1412_v13 = vld [vmem:[#allocation5 + $0x130] sm:$0xff]   ;;  %v117_v14 = vpack.c.bf16 %v96_v10, %v89_v9  ;;  %v124_v15 = vpack.c.bf16 %v110_v12, %v103_v11  ;;  %v1413_v16 = vld [vmem:[#allocation5 + $0x178] sm:$0xff]   ;;  %v87_v18 = vld [vmem:[#allocation2 + $0x20] sm:$0xff] }
  0x63   :  { %1272 = vmatpush3.bf16.msra.mxu1 %v1389_v23  ;;  %v1414_v17 = vld [vmem:[#allocation5 + $0x138] sm:$0xff]   ;;  %v109_v21 = vld [vmem:[#allocation2 + $0xd0] sm:$0xff]  ;;  %v1439_v44 = vld [vmem:[#allocation8 + $0x40] sm:$0xff]  }
  0x64   :  { %1273 = vmatprep.subr.bf16.mxu1 %v1392_v26  ;;  %v94_v19 = vld [vmem:[#allocation2 + $0x58] sm:$0xff]  ;;  %v101_v24 = vld [vmem:[#allocation2 + $0x90] sm:$0xff] }
  0x65   :  { %1246 = vmatpush3.bf16.msra.mxu0 %v1391_v25  ;;  %v102_v20 = vld [vmem:[#allocation2 + $0x98] sm:$0xff]  ;;  %v115_v22 = vpack.c.bf16 %v94_v19, %v87_v18  ;;  %v108_v25 = vld [vmem:[#allocation2 + $0xc8] sm:$0xff]  ;;  %v1449_v54 = vld [vmem:[#allocation8 + $0x68] sm:$0xff]  }
  0x66   :  { %1247 = vmatprep.subr.bf16.mxu0 %v1394_v28  ;;  %v123_v23 = vpack.c.bf16 %v109_v21, %v102_v20  ;;  %v122_v26 = vpack.c.bf16 %v108_v25, %v101_v24  ;;  %v1417_v28 = vld [vmem:[#allocation7 + $0x4] ss:$8 sps:$4 sm:$0xff]   ;;  %v1421_v31 = vld [vmem:[#allocation7 + $0x20] ss:$8 sps:$4 sm:$0xff]   ;;  %v1424_v33 = vld [vmem:[#allocation7 + $0x30] ss:$8 sps:$4 sm:$0xff]  }
  0x67   :  { %1274 = vmatpush3.bf16.msra.mxu1 %v1393_v27  ;;  %v1415_v27 = vld [vmem:[#allocation7] ss:$8 sps:$4 sm:$0xff]   ;;  %v1423_v32 = vld [vmem:[#allocation7 + $0x24] ss:$8 sps:$4 sm:$0xff]   ;;  %v1438_v41 = vld [vmem:[#allocation7 + $0x74] ss:$8 sps:$4 sm:$0xff]  }
  0x68   :  { %1275 = vmatprep.subr.bf16.mxu1 %v1396_v30  ;;  %v1418_v30 = vld [vmem:[#allocation7 + $0x10] ss:$8 sps:$4 sm:$0xff]   ;;  %v1429_v35 = vld [vmem:[#allocation7 + $0x44] ss:$8 sps:$4 sm:$0xff]   ;;  %v1427_v36 = vld [vmem:[#allocation7 + $0x40] ss:$8 sps:$4 sm:$0xff]  }
  0x69   :  { %1248 = vmatpush3.bf16.msra.mxu0 %v1395_v29  ;;  %v1420_v29 = vld [vmem:[#allocation7 + $0x14] ss:$8 sps:$4 sm:$0xff]   ;;  %v1435_v39 = vld [vmem:[#allocation7 + $0x64] ss:$8 sps:$4 sm:$0xff]   ;;  %v1433_v40 = vld [vmem:[#allocation7 + $0x60] ss:$8 sps:$4 sm:$0xff]  }
  0x6a   :  { %1289 = vmatprep.subr.bf16.mxu0 %v1398_v38  ;;  %v1430_v38 = vld [vmem:[#allocation7 + $0x50] ss:$8 sps:$4 sm:$0xff]  }
  0x6b   :  { %1276 = vmatpush3.bf16.msra.mxu1 %v1397_v34  ;;  %v1426_v34 = vld [vmem:[#allocation7 + $0x34] ss:$8 sps:$4 sm:$0xff]  }
  0x6c   :  { %564 = vmatmul.mubr.bf16.vlgmr.msra.gmra.mrb[0].mxu0 %v111_v37  ;;  %1348 = vmatprep.subr.bf16.mxu1 %v1408_v53  ;;  %v1432_v37 = vld [vmem:[#allocation7 + $0x54] ss:$8 sps:$4 sm:$0xff]  }
  0x6d   :  { %1290 = vmatpush3.bf16.msra.mxu0 %v1399_v42  ;;  %571 = vmatprep.mubr.bf16.mxu0 %v119_v57  ;;  %v1436_v42 = vld [vmem:[#allocation7 + $0x70] ss:$8 sps:$4 sm:$0xff]  }
  0x6e   :  { %613 = vmatmul.mubr.bf16.vlgmr.msra.gmra.mrb[0].mxu1 %v113_v45  ;;  %1291 = vmatprep.subr.bf16.mxu0 %v1400_v46  ;;  %v1440_v45 = vld [vmem:[#allocation8] sm:$0xff]   ;;  %v1441_v46 = vld [vmem:[#allocation8 + $0x48] sm:$0xff]  }
  0x6f   :  { %1349 = vmatpush3.bf16.msra.mxu1 %v1408_v53  ;;  %620 = vmatprep.mubr.bf16.mxu1 %v121_v1  ;;  %v1448_v53 = vld [vmem:[#allocation8 + $0x20] sm:$0xff]  }
  0x70   :  { %841 = vmatprep.subr.bf16.mxu1 %v1417_v28 }
  0x71   :  { %1292 = vmatpush3.bf16.msra.mxu0 %v1401_v47  ;;  %v1442_v47 = vld [vmem:[#allocation8 + $0x8] sm:$0xff]  }
  0x72   :  { %1293 = vmatprep.subr.bf16.mxu0 %v1402_v48  ;;  %v1443_v48 = vld [vmem:[#allocation8 + $0x50] sm:$0xff]  }
  0x74   :  { %572 = vmatmul.mubr.bf16.gmra.mrb[4].mxu0 %v118_v61 }
  0x75   :  { %1294 = vmatpush3.bf16.msra.mxu0 %v1403_v49  ;;  %661 = vmatprep.mubr.bf16.mxu0 %v116_v8  ;;  %v1444_v49 = vld [vmem:[#allocation8 + $0x10] sm:$0xff]  }
  0x76   :  { %1295 = vmatprep.subr.bf16.mxu0 %v1404_v50  ;;  %621 = vmatmul.mubr.bf16.gmra.mrb[4].mxu1 %v120_v3  ;;  %v1445_v50 = vld [vmem:[#allocation8 + $0x58] sm:$0xff]  }
  0x77   :  { %1350 = vmatprep.mubr.msk.bf16.mxu1 %vm524_vm0, %v117_v14 }
  0x79   :  { %1296 = vmatpush3.bf16.msra.mxu0 %v1405_v51  ;;  %v1446_v51 = vld [vmem:[#allocation8 + $0x18] sm:$0xff]  }
  0x7a   :  { %1297 = vmatprep.subr.bf16.mxu0 %v1406_v52  ;;  %v1447_v52 = vld [vmem:[#allocation8 + $0x60] sm:$0xff]  }
  0x7d   :  { %1298 = vmatpush3.bf16.msra.mxu0 %v1407_v56  ;;  %v1129_v56 = vld [vmem:[%s1709_s2] ss:$0 sm:$0xff] }
  0x7e   :  { %1299 = vmatprep.subr.bf16.mxu0 %v1409_v60  ;;  %1351 = vmatmul.mubr.msk.bf16.vlgmr.msra.gmra.mrb[8].mxu1 %vm524_vm0, %v124_v15 }
  0x7f   :  { %842 = vmatpush1.bf16.msra.mxu1 %v1415_v27  ;;  %873 = vmatprep.mubr.bf16.mxu1 %v1583_v43 }
  0x80   :  { %843 = vmatprep.subr.bf16.mxu1 %v1420_v29 }
  0x81   :  { %1300 = vmatpush3.bf16.msra.mxu0 %v1410_v4 }
  0x82   :  { %1301 = vmatprep.subr.bf16.mxu0 %v1411_v5 }
  0x83   :  { %844 = vmatpush1.bf16.msra.mxu1 %v1418_v30 }
  0x84   :  { %845 = vmatprep.subr.bf16.mxu1 %v1423_v32 }
  0x85   :  { %1302 = vmatpush3.bf16.msra.mxu0 %v1412_v13 }
  0x86   :  { %1303 = vmatprep.subr.bf16.mxu0 %v1413_v16 }
  0x87   :  { %846 = vmatpush1.bf16.msra.mxu1 %v1421_v31 }
  0x88   :  { %847 = vmatprep.subr.bf16.mxu1 %v1426_v34 }
  0x89   :  { %1304 = vmatpush3.bf16.msra.mxu0 %v1414_v17 }
  0x8a   :  { %1320 = vmatprep.subr.bf16.mxu0 %v1439_v44 }
  0x8b   :  { %848 = vmatpush1.bf16.msra.mxu1 %v1424_v33 }
  0x8c   :  { %662 = vmatmul.mubr.bf16.vlgmr.msra.gmra.mrb[8].mxu0 %v115_v22  ;;  %849 = vmatprep.subr.bf16.mxu1 %v1429_v35 }
  0x8d   :  { %669 = vmatprep.mubr.bf16.mxu0 %v123_v23  ;;  %1321 = vmatpush3.bf16.msra.mxu0 %v1440_v45 }
  0x8e   :  { %1322 = vmatprep.subr.bf16.mxu0 %v1441_v46 }
  0x8f   :  { %850 = vmatpush1.bf16.msra.mxu1 %v1427_v36 }
  0x90   :  { %851 = vmatprep.subr.bf16.mxu1 %v1432_v37 }
  0x91   :  { %1323 = vmatpush3.bf16.msra.mxu0 %v1442_v47 }
  0x92   :  { %1324 = vmatprep.subr.bf16.mxu0 %v1443_v48 }
  0x93   :  { %852 = vmatpush1.bf16.msra.mxu1 %v1430_v38 }
  0x94   :  { %670 = vmatmul.mubr.bf16.gmra.mrb[12].mxu0 %v122_v26  ;;  %853 = vmatprep.subr.bf16.mxu1 %v1435_v39 }
  0x95   :  { %1325 = vmatpush3.bf16.msra.mxu0 %v1444_v49 }
  0x96   :  { %1326 = vmatprep.subr.bf16.mxu0 %v1445_v50 }
  0x97   :  { %854 = vmatpush1.bf16.msra.mxu1 %v1433_v40 }
  0x98   :  { %855 = vmatprep.subr.bf16.mxu1 %v1438_v41 }
  0x99   :  { %1327 = vmatpush3.bf16.msra.mxu0 %v1446_v51 }
  0x9a   :  { %1328 = vmatprep.subr.bf16.mxu0 %v1447_v52 }
  0x9b   :  { %856 = vmatpush1.bf16.msra.mxu1 %v1436_v42 }
  0x9d   :  { %1329 = vmatpush3.bf16.msra.mxu0 %v1448_v53 }
  0x9e   :  { %1330 = vmatprep.subr.bf16.mxu0 %v1449_v54 }
 0x13f   :  { %v1249_v55 = vpop.f32.mrb[0].mxu0 }
 0x140   :  { %v1250_v57 = vpop.f32.mrb[1].mxu0 }
 0x141   :  { %v1251_v58 = vadd.f32 %v1250_v57, %v1249_v55  ;;  %v1252_v59 = vpop.f32.mrb[2].mxu0  ;;  %v1277_v60 = vpop.f32.mrb[0].mxu1  ;;  %v1450_v55 = vld [vmem:[#allocation8 + $0x28] sm:$0xff]   ;;  %v1452_v57 = vld [vmem:[#allocation8 + $0x30] sm:$0xff]  }
 0x142   :  { %v1253_v61 = vpop.f32.mrb[3].mxu0  ;;  %v1278_v0 = vpop.f32.mrb[1].mxu1  ;;  %1331 = vmatpush3.bf16.msra.mxu0 %v1450_v55 }
 0x143   :  { %v566_v62 = vadd.f32 %v1251_v58, %v1129_v56  ;;  %v1254_v63 = vadd.f32 %v1253_v61, %v1252_v59  ;;  %v1279_v1 = vadd.f32 %v1278_v0, %v1277_v60  ;;  %v1280_v2 = vpop.f32.mrb[2].mxu1  ;;  %v1453_v58 = vld [vmem:[#allocation8 + $0x78] sm:$0xff]   ;;  %v751_v60 = vlaneseq }
 0x144   :  { %v1281_v4 = vpop.f32.mrb[3].mxu1  ;;  %v1454_v59 = vld [vmem:[#allocation8 + $0x38] sm:$0xff]  }
 0x145   :  { %v569_v3 = vadd.f32 %v1254_v63, %v1129_v56  ;;  %v615_v5 = vadd.f32 %v1279_v1, %v566_v62  ;;  %v1282_v6 = vadd.f32 %v1281_v4, %v1280_v2  ;;  %v752_v61 = vshrl.u32 %v751_v60, 7 }
 0x147   :  { %v618_v7 = vadd.f32 %v1282_v6, %v569_v3  ;;  %v1255_v8 = vpop.f32.mrb[4].mxu0  ;;  %v753_v62 = vsub.s32 0, %v752_v61  ;;  %v757_v63 = vsub.s32 1, %v752_v61 }
 0x148   :  { %v1256_v9 = vpop.f32.mrb[5].mxu0 }
 0x149   :  { %v1257_v10 = vadd.f32 %v1256_v9, %v1255_v8  ;;  %v1258_v11 = vpop.f32.mrb[6].mxu0  ;;  %v1283_v12 = vpop.f32.mrb[4].mxu1 }
 0x14a   :  { %v1259_v13 = vpop.f32.mrb[7].mxu0  ;;  %v1284_v16 = vpop.f32.mrb[5].mxu1 }
 0x14b   :  { %v574_v14 = vadd.f32 %v1257_v10, %v1129_v56  ;;  %v1260_v15 = vadd.f32 %v1259_v13, %v1258_v11  ;;  %v1285_v17 = vadd.f32 %v1284_v16, %v1283_v12  ;;  %v1286_v18 = vpop.f32.mrb[6].mxu1 }
 0x14c   :  { %v1287_v20 = vpop.f32.mrb[7].mxu1 }
 0x14d   :  { %v577_v19 = vadd.f32 %v1260_v15, %v1129_v56  ;;  %v623_v21 = vadd.f32 %v1285_v17, %v574_v14  ;;  %v1288_v22 = vadd.f32 %v1287_v20, %v1286_v18  ;;  %v1451_v56 = vld [vmem:[#allocation8 + $0x70] sm:$0xff]  }
 0x14e   :  { %1332 = vmatprep.subr.bf16.mxu0 %v1451_v56 }
 0x14f   :  { %v626_v23 = vadd.f32 %v1288_v22, %v577_v19  ;;  %1333 = vmatpush3.bf16.msra.mxu0 %v1452_v57 }
 0x150   :  { %1334 = vmatprep.subr.bf16.mxu0 %v1453_v58 }
 0x151   :  { %v1352_v24 = vpop.f32.mrb[8].mxu1 }
 0x152   :  { %v712_v25 = vpop.f32.mrb[9].mxu1 }
 0x153   :  { %v1353_v26 = vpop.f32.mrb[10].mxu1  ;;  %1335 = vmatpush3.bf16.msra.mxu0 %v1454_v59 }
 0x154   :  { %v715_v27 = vpop.f32.mrb[11].mxu1 }
 0x15f   :  { %v1305_v28 = vpop.f32.mrb[8].mxu0 }
 0x160   :  { %v1306_v29 = vpop.f32.mrb[9].mxu0 }
 0x161   :  { %v1307_v30 = vadd.f32 %v1306_v29, %v1305_v28  ;;  %v1308_v31 = vpop.f32.mrb[10].mxu0 }
 0x162   :  { %v1309_v32 = vpop.f32.mrb[11].mxu0 }
 0x163   :  { %v664_v33 = vadd.f32 %v1307_v30, %v615_v5  ;;  %v1310_v34 = vadd.f32 %v1309_v32, %v1308_v31 }
 0x165   :  { %v713_v35 = vadd.f32 %v712_v25, %v664_v33  ;;  %v667_v36 = vadd.f32 %v1310_v34, %v618_v7  ;;  %v1197_v34 = vld [vmem:[%s1713_s6] ss:$0 sm:$0xff]  ;;  %s1543_s6 = scalar_lea.vmem %s1116_s13, 256 }
 0x166   :  { %p1544_p4 = scmp.ne.s32.totalorder %s1116_s13, %s1543_s6  ;;  %p1549_p6 = scmp.lt.s32.totalorder %s1543_s6, %s1543_s6 }
 0x167   :  { %v716_v37 = vadd.f32 %v715_v27, %v667_v36  ;;  %v1311_v38 = vpop.f32.mrb[12].mxu0  ;;  %v727_v40 = vmax.f32 %v713_v35, 0.0 }
 0x168   :  { %v1312_v39 = vpop.f32.mrb[13].mxu0  ;;  %p1550_p7 = por %p1549_p6, %p1548_p5 }
 0x169   :  { %v728_v41 = vmax.f32 %v716_v37, 0.0  ;;  %v1313_v42 = vadd.f32 %v1312_v39, %v1311_v38  ;;  %v1314_v44 = vpop.f32.mrb[14].mxu0 }
 0x16a   :  { %v1315_v45 = vpop.f32.mrb[15].mxu0  ;;  %p1551_p8 = pnand %p1550_p7, %p1544_p4 }
 0x16b   :  { %v731_v46 = vpack.c.bf16 %v728_v41, %v727_v40  ;;  %v672_v47 = vadd.f32 %v1313_v42, %v623_v21  ;;  %v1316_v48 = vadd.f32 %v1315_v45, %v1314_v44 }
 0x16d   :  { %v721_v49 = vadd.f32 %v1352_v24, %v672_v47  ;;  %v675_v50 = vadd.f32 %v1316_v48, %v626_v23  ;;  %874 = vmatmul.mubr.bf16.vlgmr.msra.gmra.mrb[12].mxu1 %v731_v46 }
 0x16e   :  { %883 = vmatprep.mubr.bf16.mxu1 %v1583_v43  ;;  %v749_v43 = vld [vmem:[%s1711_s4] sm:$0x3] }
 0x16f   :  { %v724_v51 = vadd.f32 %v1353_v26, %v675_v50  ;;  %v729_v52 = vmax.f32 %v721_v49, 0.0  ;;  %v754_v0 = vrot.slane %v749_v43, %v753_v62  ;;  %v758_v1 = vrot.slane %v749_v43, %v757_v63 }
 0x171   :  { %v730_v53 = vmax.f32 %v724_v51, 0.0 }
 0x173   :  { %v732_v54 = vpack.c.bf16 %v730_v53, %v729_v52 }
 0x175   :  { %884 = vmatmul.mubr.bf16.gmra.mrb[16].mxu1 %v732_v54 }
 0x240   :  { %v875_v2 = vpop.f32.mrb[12].mxu1 }
 0x241   :  { %v876_v3 = vadd.f32 %v875_v2, %v754_v0  ;;  %v877_v4 = vpop.f32.mrb[13].mxu1 }
 0x242   :  { %v878_v5 = vadd.f32 %v877_v4, %v758_v1  ;;  %v879_v6 = vpop.f32.mrb[14].mxu1 }
 0x243   :  { %v880_v7 = vadd.f32 %v879_v6, %v754_v0  ;;  %v881_v8 = vpop.f32.mrb[15].mxu1  ;;  %v894_v10 = vmax.f32 %v876_v3, 0.0 }
 0x244   :  { %v882_v9 = vadd.f32 %v881_v8, %v758_v1  ;;  %v895_v12 = vmax.f32 %v878_v5, 0.0 }
 0x245   :  { %v896_v11 = vmax.f32 %v880_v7, 0.0 }
 0x246   :  { %v897_v13 = vmax.f32 %v882_v9, 0.0 }
 0x247   :  { %v902_v14 = vpack.c.bf16 %v896_v11, %v894_v10 }
 0x248   :  { %v903_v15 = vpack.c.bf16 %v897_v13, %v895_v12  ;;  %v885_v16 = vpop.f32.mrb[16].mxu1 }
 0x249   :  { %v886_v17 = vadd.f32 %v885_v16, %v754_v0  ;;  %v887_v18 = vpop.f32.mrb[17].mxu1 }
 0x24a   :  { %v888_v19 = vadd.f32 %v887_v18, %v758_v1  ;;  %v889_v20 = vpop.f32.mrb[18].mxu1  ;;  %1073 = vmatprep.mubr.bf16.mxu0 %v903_v15 }
 0x24b   :  { %v890_v21 = vadd.f32 %v889_v20, %v754_v0  ;;  %v891_v22 = vpop.f32.mrb[19].mxu1  ;;  %1074 = vmatmul.mubr.bf16.vlgmr.msra.gmra.mrb[16].mxu0 %v902_v14  ;;  %v898_v24 = vmax.f32 %v886_v17, 0.0 }
 0x24c   :  { %v892_v23 = vadd.f32 %v891_v22, %v758_v1  ;;  %v899_v26 = vmax.f32 %v888_v19, 0.0 }
 0x24d   :  { %v900_v25 = vmax.f32 %v890_v21, 0.0 }
 0x24e   :  { %v901_v27 = vmax.f32 %v892_v23, 0.0 }
 0x24f   :  { %v904_v28 = vpack.c.bf16 %v900_v25, %v898_v24 }
 0x250   :  { %v905_v29 = vpack.c.bf16 %v901_v27, %v899_v26 }
 0x252   :  { %1081 = vmatprep.mubr.bf16.mxu0 %v905_v29 }
 0x253   :  { %1082 = vmatmul.mubr.bf16.gmra.mrb[20].mxu0 %v904_v28 }
 0x31e   :  { %v1336_v30 = vpop.f32.mrb[16].mxu0 }
 0x31f   :  { %v1337_v31 = vpop.f32.mrb[17].mxu0 }
 0x320   :  { %v1338_v32 = vadd.f32 %v1337_v31, %v1336_v30  ;;  %v1339_v33 = vpop.f32.mrb[18].mxu0 }
 0x321   :  { %v1340_v35 = vpop.f32.mrb[19].mxu0 }
 0x322   :  { %v1341_v36 = vadd.f32 %v1340_v35, %v1339_v33  ;;  %v1076_v37 = vadd.f32 %v1338_v32, %v1197_v34 }
 0x324   :  { %v1079_v38 = vadd.f32 %v1341_v36, %v1197_v34 }
 0x326   :  { %v1225_v39 = vpack.c.bf16 %v1079_v38, %v1076_v37  ;;  %v1342_v40 = vpop.f32.mrb[20].mxu0 }
 0x327   :  { %v1343_v41 = vpop.f32.mrb[21].mxu0 }
 0x328   :  { %1226 = vst [vmem:[#allocation10] sm:$0xff] %v1225_v39   ;;  %v1344_v42 = vadd.f32 %v1343_v41, %v1342_v40  ;;  %v1345_v44 = vpop.f32.mrb[22].mxu0 }
 0x329   :  { %v1346_v45 = vpop.f32.mrb[23].mxu0 }
 0x32a   :  { %v1347_v46 = vadd.f32 %v1346_v45, %v1345_v44  ;;  %v1084_v47 = vadd.f32 %v1344_v42, %v1197_v34 }
 0x32c   :  { %v1087_v48 = vadd.f32 %v1347_v46, %v1197_v34 }
 0x32e   :  { %v1230_v49 = vpack.c.bf16 %v1087_v48, %v1084_v47 }
 0x330   :  { %1232 = vst [vmem:[#allocation10 + $0x8] sm:$0xff] %v1230_v49  }
 0x331   :  { %1554 = shalt.err (!%p1551_p8)
}
 0x332   :  { %s1555_s17 = scalar_lea.hbm %s1714_s7, 256 }
 0x333   :  { %p1556_p9 = scmp.ne.s32.totalorder %s1714_s7, %s1555_s17  ;;  %p1559_p10 = scmp.lt.u32.totalorder %s1555_s17, %s1714_s7 }
 0x335   :  { %p1561_p11 = pnand %p1559_p10, %p1556_p9 }
 0x337   :  { %1564 = shalt.err (!%p1561_p11)
}
 0x338   :  { %1121 = dma.vmem_to_hbm [thread:$0]  %s1116_s13, 256, %s1714_s7, [#allocation4], %s1574_s11, %s1574_s11, %s1575_s12  }
 0x339   :  { %1571 = dma.done.wait [#allocation4], 256  }
 0x33a   :  { %1572 = vsyncadd [#allocation4], 4294967040 }
 0x33b   :  { %1125 = vsyncpa [#allocation3], 1 }
 0x33c   :  { %1126 = vsyncpa [#allocation6], 1 }
 0x33d   :  { %1127 = vsyncpa [#allocation9], 1 }
 0x33e   :  { %1128 = vsyncpa [#allocation4], 1 }

</bundles_post_ra>
